<compile_context>
chip_gen: v7x
topology: tpu7x:2x2x1
jax: 0.10.0
libtpu: 0.0.40
codegen_flags: <defaults>
</compile_context>

<pallas_src>
import functools
import math

import jax
import jax.numpy as jnp
import numpy as np
from jax.experimental import pallas as pl
from jax.experimental.pallas import tpu as pltpu

NEG_INF = -1e30


def precompute_rotary(max_seq_len: int, dim: int):
    """Equivalent of the PyTorch precompute_rotary_emb (cos/sin of (L, dim//2))."""
    pos = jnp.arange(max_seq_len, dtype=jnp.float32)[:, None]
    div = jnp.exp(jnp.arange(0, dim, 2, dtype=jnp.float32) * (-math.log(10000.0) / dim))
    ang = pos * div
    return jnp.cos(ang), jnp.sin(ang)


# ---------------------------------------------------------------------------
# Host-side (trace-time) constant preprocessing.
# ---------------------------------------------------------------------------
def _rank_major_perm(n_heads, rank):
    """(h, r)-ordered A-factor columns -> (r, h)-ordered contiguous rank slices."""
    return np.asarray([h * rank + r for r in range(rank) for h in range(n_heads)],
                      np.int32)


def _deinterleave_perm(rank, head_dim):
    """Within each rank block: interleaved pairs -> rotate-half layout [even|odd]."""
    p = head_dim // 2
    idx = []
    for r in range(rank):
        idx += [r * head_dim + 2 * i for i in range(p)]
        idx += [r * head_dim + 2 * i + 1 for i in range(p)]
    return np.asarray(idx, np.int32)


def _head_broadcast_matrix(n_heads, head_dim):
    """(H, D) 0/1: a_r @ M broadcasts a_r[:, h] over head h's head_dim lanes."""
    m = np.zeros((n_heads, n_heads * head_dim), np.float32)
    for h in range(n_heads):
        m[h, h * head_dim:(h + 1) * head_dim] = 1.0
    return m


def _head_tile_matrix(n_heads, head_dim):
    """(Dh, D) 0/1: b_r @ M tiles the (TS, Dh) B factor across all heads."""
    m = np.zeros((head_dim, n_heads * head_dim), np.float32)
    for h in range(n_heads):
        m[np.arange(head_dim), h * head_dim + np.arange(head_dim)] = 1.0
    return m


def _device_kind():
    try:
        return jax.devices()[0].device_kind.lower()
    except Exception:  # pragma: no cover - defensive
        return ""


def _vmem_limit_bytes(kind):
    if "v7" in kind:
        return 48 * 1024 * 1024          # v7x: 64 MiB / TC physical — leave headroom
    if ("v5" in kind) or ("v6" in kind) or ("trillium" in kind):
        return 96 * 1024 * 1024          # v5e/v5p/v6e: 128 MiB physical
    return 64 * 1024 * 1024              # v4 / unknown: stay moderate


def _pick_blocks(seq_len, is_v7x):
    bq = seq_len
    for t in (256, 128):
        if seq_len % t == 0:
            bq = t
            break
    # TODO(synk): pad / mask a ragged last block instead of falling back to one
    # full-length block for large seq_len that is not a multiple of 128.
    bk_cap = 512 if is_v7x else 1024     # smaller KV tiles on v7x (64 MiB VMEM)
    bk = bq
    while bk * 2 <= bk_cap and seq_len % (bk * 2) == 0:
        bk *= 2
    return bq, bk


def _replicated_spec(arr):
    nd = arr.ndim
    return pl.BlockSpec(arr.shape, lambda *_: (0,) * nd)


# ---------------------------------------------------------------------------
# Kernel A: fused projections + RoPE + per-rank tensor-product Q/K/V build.
# ---------------------------------------------------------------------------
def _proj_tpa_kernel(n_heads, head_dim, q_rank, kv_rank, compute_dtype,
                     x_ref, wf_ref, bf_ref, cos_ref, sin_ref, ea_ref, eb_ref,
                     q_ref, k_ref, v_ref):
    f32 = jnp.float32
    n_aq = n_heads * q_rank
    n_bq = q_rank * head_dim
    n_ak = n_heads * kv_rank
    n_bk = kv_rank * head_dim

    x = x_ref[0]                                              # (TS, D) compute dtype
    # One wide MXU matmul for all six factor projections.
    y = jnp.dot(x, wf_ref[...], preferred_element_type=f32) + bf_ref[...]

    o = 0
    aq = y[:, o:o + n_aq]; o += n_aq
    bq = y[:, o:o + n_bq]; o += n_bq
    ak = y[:, o:o + n_ak]; o += n_ak
    bk = y[:, o:o + n_bk]; o += n_bk
    av = y[:, o:o + n_ak]; o += n_ak
    bv = y[:, o:o + n_bk]

    cos = cos_ref[...]                                        # (TS, Dh) = [cos | cos]
    sin = sin_ref[...]                                        # (TS, Dh) = [-sin | sin]
    ea = ea_ref[...]                                          # (H,  D) head-broadcast
    eb = eb_ref[...]                                          # (Dh, D) head-tile

    def reconstruct(a, b, rank, rope):
        # out[s, h*Dh + d] = sum_r a[s, r*H + h] * b[s, r*Dh + d]
        acc = None
        for r in range(rank):
            a_r = a[:, r * n_heads:(r + 1) * n_heads]         # (TS, H)
            b_r = b[:, r * head_dim:(r + 1) * head_dim]       # (TS, Dh)
            if rope:
                # rotate-half RoPE (columns permuted host-side; sign folded in sin)
                b_r = b_r * cos + pltpu.roll(b_r, shift=head_dim // 2, axis=1) * sin
            a_e = jnp.dot(a_r.astype(compute_dtype), ea, preferred_element_type=f32)
            b_e = jnp.dot(b_r.astype(compute_dtype), eb, preferred_element_type=f32)
            term = a_e * b_e                                  # (TS, D)
            acc = term if acc is None else acc + term
        return acc

    scale = 1.0 / math.sqrt(head_dim)
    # Single lane-dense store per tensor; 1/sqrt(Dh) folded into Q.
    q_ref[0] = (reconstruct(aq, bq, q_rank, True) * scale).astype(q_ref.dtype)
    k_ref[0] = reconstruct(ak, bk, kv_rank, True).astype(k_ref.dtype)
    v_ref[0] = reconstruct(av, bv, kv_rank, False).astype(v_ref.dtype)


# ---------------------------------------------------------------------------
# Kernel B: causal flash attention (all heads per step) + fused output proj.
# ---------------------------------------------------------------------------
def _flash_outproj_kernel(n_heads, head_dim, block_q, block_k, compute_dtype,
                          approx_recip,
                          q_ref, k_ref, v_ref, wo_ref, bo_ref,
                          o_ref, m_sc, l_sc, acc_sc):
    f32 = jnp.float32
    qi = pl.program_id(1)
    ki = pl.program_id(2)

    # Last KV block intersecting the causal triangle of this query tile.
    kmax = ((qi + 1) * block_q - 1) // block_k
    is_valid = ki * block_k < (qi + 1) * block_q             # not entirely above diagonal
    is_below = (ki + 1) * block_k <= qi * block_q            # entirely below diagonal

    @pl.when(ki == 0)
    def _init():
        m_sc[...] = jnp.full_like(m_sc, NEG_INF)
        l_sc[...] = jnp.zeros_like(l_sc)
        acc_sc[...] = jnp.zeros_like(acc_sc)

    def online_softmax_step(masked):
        q = q_ref[0]                                         # (bq, D), pre-scaled
        k = k_ref[0]                                         # (bk, D)
        v = v_ref[0]
        if masked:
            row = qi * block_q + jax.lax.broadcasted_iota(jnp.int32, (block_q, block_k), 0)
            col = ki * block_k + jax.lax.broadcasted_iota(jnp.int32, (block_q, block_k), 1)
            causal = row >= col
        for h in range(n_heads):
            sl = slice(h * head_dim, (h + 1) * head_dim)
            s = jax.lax.dot_general(q[:, sl], k[:, sl], (((1,), (1,)), ((), ())),
                                    preferred_element_type=f32)          # (bq, bk)
            if masked:
                s = jnp.where(causal, s, NEG_INF)
            m_prev = m_sc[h]
            m_new = jnp.maximum(m_prev, jnp.max(s, axis=-1, keepdims=True))
            alpha = jnp.exp(m_prev - m_new)
            p = jnp.exp(s - m_new)
            l_sc[h] = alpha * l_sc[h] + jnp.sum(p, axis=-1, keepdims=True)
            acc_sc[h] = alpha * acc_sc[h] + jnp.dot(
                p.astype(compute_dtype), v[:, sl], preferred_element_type=f32)
            m_sc[h] = m_new

    # Causal masking only on the diagonal block; fully-below blocks skip it.
    @pl.when(is_below)
    def _below_diag():
        online_softmax_step(masked=False)

    @pl.when(is_valid & jnp.logical_not(is_below))
    def _on_diag():
        online_softmax_step(masked=True)

    @pl.when(ki == kmax)
    def _finish():
        # Per-head partial output projection (no lane concat, wo row-sliced).
        # TODO(synk): for very large d_model on v7x, drop this fusion and let
        # XLA run the (B*S, D) x (D, D) GEMM to avoid holding wo resident.
        out = jnp.zeros((block_q, n_heads * head_dim), f32)
        for h in range(n_heads):
            inv = pl.reciprocal(l_sc[h], approx=approx_recip)            # (bq, 1)
            ctx_h = (acc_sc[h] * inv).astype(compute_dtype)              # (bq, Dh)
            out = out + jnp.dot(ctx_h, wo_ref[h * head_dim:(h + 1) * head_dim, :],
                                preferred_element_type=f32)
        o_ref[0] = (out + bo_ref[...]).astype(o_ref.dtype)


# ---------------------------------------------------------------------------
# Wrapper
# ---------------------------------------------------------------------------
def tensor_product_attention(x, params, n_heads, q_rank, kv_rank, cos, sin,
                             compute_dtype=jnp.bfloat16):
    B, S, d_model = x.shape
    assert d_model % n_heads == 0
    head_dim = d_model // n_heads
    assert head_dim % 2 == 0, "rotate-half RoPE layout requires an even head_dim"
    f32 = jnp.float32

    kind = _device_kind()
    is_v7x = "v7" in kind
    vmem_limit = _vmem_limit_bytes(kind)
    block_q, block_k = _pick_blocks(S, is_v7x)
    ns_q, ns_k = S // block_q, S // block_k

    # ---- constant (trace-time) preprocessing ----
    perm_aq = _rank_major_perm(n_heads, q_rank)
    perm_akv = _rank_major_perm(n_heads, kv_rank)
    perm_bq = _deinterleave_perm(q_rank, head_dim)
    perm_bk = _deinterleave_perm(kv_rank, head_dim)

    wf = jnp.concatenate([
        jnp.take(params['waq'], perm_aq, axis=1),
        jnp.take(params['wbq'], perm_bq, axis=1),
        jnp.take(params['wak'], perm_akv, axis=1),
        jnp.take(params['wbk'], perm_bk, axis=1),
        jnp.take(params['wav'], perm_akv, axis=1),
        params['wbv'],
    ], axis=1).astype(compute_dtype)
    bf = jnp.concatenate([
        jnp.take(params['baq'], perm_aq, axis=1),
        jnp.take(params['bbq'], perm_bq, axis=1),
        jnp.take(params['bak'], perm_akv, axis=1),
        jnp.take(params['bbk'], perm_bk, axis=1),
        jnp.take(params['bav'], perm_akv, axis=1),
        params['bbv'],
    ], axis=1).astype(f32)

    ea = jnp.asarray(_head_broadcast_matrix(n_heads, head_dim), compute_dtype)
    eb = jnp.asarray(_head_tile_matrix(n_heads, head_dim), compute_dtype)

    cos_s = cos[:S].astype(f32)
    sin_s = sin[:S].astype(f32)
    cos_rh = jnp.concatenate([cos_s, cos_s], axis=1)          # (S, Dh)
    sin_rh = jnp.concatenate([-sin_s, sin_s], axis=1)         # rotate-half sign folded

    wo = params['wo'].astype(compute_dtype)
    bo = params['bo'].astype(f32)

    # Cast once in HBM: halves Kernel A's dominant input stream.
    x_in = x.astype(compute_dtype)

    # ---- Kernel A: fused projections + RoPE + tensor-product Q/K/V ----
    kern_a = functools.partial(_proj_tpa_kernel, n_heads, head_dim, q_rank, kv_rank,
                               compute_dtype)
    qkv_shape = jax.ShapeDtypeStruct((B, S, d_model), compute_dtype)
    sd_spec = pl.BlockSpec((1, block_q, d_model), lambda b, si: (b, si, 0))
    rope_spec = pl.BlockSpec((block_q, head_dim), lambda b, si: (si, 0))
    # NOTE: replicated constants are still double-buffered by the default
    # pipeline; they are small here (ea/eb/cos/sin) so pl.Buffered(1) is not used.
    q_int, k_int, v_int = pl.pallas_call(
        kern_a,
        out_shape=(qkv_shape, qkv_shape, qkv_shape),
        grid_spec=pltpu.PrefetchScalarGridSpec(
            num_scalar_prefetch=0,
            grid=(B, ns_q),
            in_specs=[
                sd_spec,
                _replicated_spec(wf), _replicated_spec(bf),
                rope_spec, rope_spec,
                _replicated_spec(ea), _replicated_spec(eb),
            ],
            out_specs=(sd_spec, sd_spec, sd_spec)),
        compiler_params=pltpu.CompilerParams(
            dimension_semantics=("parallel", "parallel"),
            vmem_limit_bytes=vmem_limit),
    )(x_in, wf, bf, cos_rh, sin_rh, ea, eb)

    # ---- Kernel B: causal flash attention (all heads / step) + out_proj ----
    approx_recip = compute_dtype != jnp.float32
    kern_b = functools.partial(_flash_outproj_kernel, n_heads, head_dim,
                               block_q, block_k, compute_dtype, approx_recip)

    def kv_index(b, qi, ki):
        # Clamp above-diagonal KV blocks to the last causally-needed block so the
        # pipeline reuses the resident buffer instead of DMA-ing unused K/V.
        kmax = ((qi + 1) * block_q - 1) // block_k
        return (b, jnp.minimum(ki, kmax), 0)

    out = pl.pallas_call(
        kern_b,
        out_shape=jax.ShapeDtypeStruct((B, S, d_model), x.dtype),
        grid_spec=pltpu.PrefetchScalarGridSpec(
            num_scalar_prefetch=0,
            grid=(B, ns_q, ns_k),
            in_specs=[
                pl.BlockSpec((1, block_q, d_model), lambda b, qi, ki: (b, qi, 0)),
                pl.BlockSpec((1, block_k, d_model), kv_index),
                pl.BlockSpec((1, block_k, d_model), kv_index),
                _replicated_spec(wo), _replicated_spec(bo),
            ],
            out_specs=pl.BlockSpec((1, block_q, d_model), lambda b, qi, ki: (b, qi, 0)),
            scratch_shapes=[
                pltpu.VMEM((n_heads, block_q, 1), jnp.float32),         # running max
                pltpu.VMEM((n_heads, block_q, 1), jnp.float32),         # running denom
                pltpu.VMEM((n_heads, block_q, head_dim), jnp.float32),  # context accum
            ]),
        compiler_params=pltpu.CompilerParams(
            dimension_semantics=("parallel", "parallel", "arbitrary"),
            vmem_limit_bytes=vmem_limit),
    )(q_int, k_int, v_int, wo, bo)
    return out


# ---------------------------------------------------------------------------
# Plain-JAX reference (transcription of the PyTorch forward pass)
# ---------------------------------------------------------------------------
def reference(x, params, n_heads, q_rank, kv_rank, cos, sin):
    B, S, D = x.shape
    Dh = D // n_heads
    aq = (x @ params['waq'] + params['baq']).reshape(B, S, n_heads, q_rank)
    ak = (x @ params['wak'] + params['bak']).reshape(B, S, n_heads, kv_rank)
    av = (x @ params['wav'] + params['bav']).reshape(B, S, n_heads, kv_rank)
    bq = (x @ params['wbq'] + params['bbq']).reshape(B, S, q_rank, Dh)
    bk = (x @ params['wbk'] + params['bbk']).reshape(B, S, kv_rank, Dh)
    bv = (x @ params['wbv'] + params['bbv']).reshape(B, S, kv_rank, Dh)

    def rope(t):
        x1 = t[..., 0::2]
        x2 = t[..., 1::2]
        c = cos[:S][None, :, None, :]
        s_ = sin[:S][None, :, None, :]
        o1 = x1 * c - x2 * s_
        o2 = x1 * s_ + x2 * c
        return jnp.stack([o1, o2], axis=-1).reshape(t.shape)

    bq = rope(bq)
    bk = rope(bk)

    q = jnp.einsum('bshr,bsrd->bshd', aq, bq)
    k = jnp.einsum('bshr,bsrd->bshd', ak, bk)
    v = jnp.einsum('bshr,bsrd->bshd', av, bv)

    scale = 1.0 / math.sqrt(Dh)
    scores = jnp.einsum('bqhd,bkhd->bhqk', q, k) * scale
    mask = jnp.tril(jnp.ones((S, S), dtype=bool))
    scores = jnp.where(mask[None, None], scores, -jnp.inf)
    p = jax.nn.softmax(scores, axis=-1)
    ctx = jnp.einsum('bhqk,bkhd->bqhd', p, v)
    return ctx.reshape(B, S, D) @ params['wo'] + params['bo']


if __name__ == "__main__":
    d_model, n_heads, q_rank, kv_rank, max_seq_len = 32, 4, 2, 2, 16
    B, S = 2, 8
    head_dim = d_model // n_heads

    key = jax.random.PRNGKey(0)
    ks = jax.random.split(key, 20)

    def w_init(k, shape, fan_in):
        return jax.random.normal(k, shape, jnp.float32) / math.sqrt(fan_in)

    def b_init(k, n):
        return 0.01 * jax.random.normal(k, (1, n), jnp.float32)

    params = {
        'waq': w_init(ks[0], (d_model, n_heads * q_rank), d_model),
        'baq': b_init(ks[1], n_heads * q_rank),
        'wbq': w_init(ks[2], (d_model, q_rank * head_dim), d_model),
        'bbq': b_init(ks[3], q_rank * head_dim),
        'wak': w_init(ks[4], (d_model, n_heads * kv_rank), d_model),
        'bak': b_init(ks[5], n_heads * kv_rank),
        'wbk': w_init(ks[6], (d_model, kv_rank * head_dim), d_model),
        'bbk': b_init(ks[7], kv_rank * head_dim),
        'wav': w_init(ks[8], (d_model, n_heads * kv_rank), d_model),
        'bav': b_init(ks[9], n_heads * kv_rank),
        'wbv': w_init(ks[10], (d_model, kv_rank * head_dim), d_model),
        'bbv': b_init(ks[11], kv_rank * head_dim),
        'wo': w_init(ks[12], (d_model, d_model), d_model),
        'bo': b_init(ks[13], d_model),
    }

    cos, sin = precompute_rotary(max_seq_len, head_dim)
    x = jax.random.normal(ks[14], (B, S, d_model), jnp.float32)

    ref = reference(x, params, n_heads, q_rank, kv_rank, cos, sin)
    ref = jax.block_until_ready(ref)

    # Full-precision compute path: strict(ish) correctness check.
    out_f32 = tensor_product_attention(x, params, n_heads, q_rank, kv_rank, cos, sin,
                                       compute_dtype=jnp.float32)
    out_f32 = jax.block_until_ready(out_f32)
    np.testing.assert_allclose(np.asarray(out_f32), np.asarray(ref),
                               rtol=3e-2, atol=2e-2)

    # bf16-MXU path (the recommended fast path): loose smoke check.
    out_bf16 = tensor_product_attention(x, params, n_heads, q_rank, kv_rank, cos, sin,
                                        compute_dtype=jnp.bfloat16)
    out_bf16 = jax.block_until_ready(out_bf16)
    np.testing.assert_allclose(np.asarray(out_bf16), np.asarray(ref),
                               rtol=1e-1, atol=1e-1)

    print("KERNEL_OK")
</pallas_src>

<mosaic_0001>
module attributes {stable_mosaic.version = 11 : i64} {
  func.func @_proj_tpa_kernel(%arg0: i32, %arg1: i32, %arg2: memref<1x8x32xf32, #tpu.memory_space<vmem>>, %arg3: memref<32x72xf32, #tpu.memory_space<vmem>>, %arg4: memref<1x72xf32, #tpu.memory_space<vmem>>, %arg5: memref<8x8xf32, #tpu.memory_space<vmem>>, %arg6: memref<8x8xf32, #tpu.memory_space<vmem>>, %arg7: memref<4x32xf32, #tpu.memory_space<vmem>>, %arg8: memref<8x32xf32, #tpu.memory_space<vmem>>, %arg9: memref<1x8x32xf32, #tpu.memory_space<vmem>>, %arg10: memref<1x8x32xf32, #tpu.memory_space<vmem>>, %arg11: memref<1x8x32xf32, #tpu.memory_space<vmem>>) attributes {dimension_semantics = [#tpu.dimension_semantics<parallel>, #tpu.dimension_semantics<parallel>], iteration_bounds = array<i64: 2, 1>, scalar_prefetch = 0 : i64, scratch_operands = 0 : i64, tpu.core_type = #tpu.core_type<tc>, window_params = [{transform_indices = @transform_0, window_bounds = array<i64: 1, 8, 32>}, {pipeline_mode = #tpu.pipeline_mode<synchronous>, transform_indices = @transform_1, window_bounds = array<i64: 32, 72>}, {pipeline_mode = #tpu.pipeline_mode<synchronous>, transform_indices = @transform_2, window_bounds = array<i64: 1, 72>}, {transform_indices = @transform_3, window_bounds = array<i64: 8, 8>}, {transform_indices = @transform_4, window_bounds = array<i64: 8, 8>}, {pipeline_mode = #tpu.pipeline_mode<synchronous>, transform_indices = @transform_5, window_bounds = array<i64: 4, 32>}, {pipeline_mode = #tpu.pipeline_mode<synchronous>, transform_indices = @transform_6, window_bounds = array<i64: 8, 32>}, {transform_indices = @transform_7, window_bounds = array<i64: 1, 8, 32>}, {transform_indices = @transform_8, window_bounds = array<i64: 1, 8, 32>}, {transform_indices = @transform_9, window_bounds = array<i64: 1, 8, 32>}]} {
    %c0 = arith.constant 0 : index
    %c0_0 = arith.constant 0 : index
    %c0_1 = arith.constant 0 : index
    %0 = vector.load %arg2[%c0, %c0_0, %c0_1] : memref<1x8x32xf32, #tpu.memory_space<vmem>>, vector<1x8x32xf32>
    %1 = vector.shape_cast %0 : vector<1x8x32xf32> to vector<8x32xf32>
    %c0_2 = arith.constant 0 : index
    %c0_3 = arith.constant 0 : index
    %2 = vector.load %arg3[%c0_2, %c0_3] : memref<32x72xf32, #tpu.memory_space<vmem>>, vector<32x72xf32>
    %cst = arith.constant dense<0.000000e+00> : vector<8x72xf32>
    %3 = tpu.matmul %1, %2, %cst {dimension_numbers = #tpu.dot_dimension_numbers<[1], [0], [0], [1], [0, 0, 1, 1], [], []>} : vector<8x32xf32>, vector<32x72xf32>, vector<8x72xf32> -> vector<8x72xf32>
    %c0_4 = arith.constant 0 : index
    %c0_5 = arith.constant 0 : index
    %4 = vector.load %arg4[%c0_4, %c0_5] : memref<1x72xf32, #tpu.memory_space<vmem>>, vector<1x72xf32>
    %5 = vector.broadcast %4 : vector<1x72xf32> to vector<8x72xf32>
    %6 = arith.addf %3, %5 : vector<8x72xf32>
    %7 = vector.extract_strided_slice %6 {offsets = [0, 0], sizes = [8, 8], strides = [1, 1]} : vector<8x72xf32> to vector<8x8xf32>
    %8 = vector.extract_strided_slice %6 {offsets = [0, 8], sizes = [8, 16], strides = [1, 1]} : vector<8x72xf32> to vector<8x16xf32>
    %9 = vector.extract_strided_slice %6 {offsets = [0, 24], sizes = [8, 8], strides = [1, 1]} : vector<8x72xf32> to vector<8x8xf32>
    %10 = vector.extract_strided_slice %6 {offsets = [0, 32], sizes = [8, 16], strides = [1, 1]} : vector<8x72xf32> to vector<8x16xf32>
    %11 = vector.extract_strided_slice %6 {offsets = [0, 48], sizes = [8, 8], strides = [1, 1]} : vector<8x72xf32> to vector<8x8xf32>
    %12 = vector.extract_strided_slice %6 {offsets = [0, 56], sizes = [8, 16], strides = [1, 1]} : vector<8x72xf32> to vector<8x16xf32>
    %c0_6 = arith.constant 0 : index
    %c0_7 = arith.constant 0 : index
    %13 = vector.load %arg5[%c0_6, %c0_7] : memref<8x8xf32, #tpu.memory_space<vmem>>, vector<8x8xf32>
    %c0_8 = arith.constant 0 : index
    %c0_9 = arith.constant 0 : index
    %14 = vector.load %arg6[%c0_8, %c0_9] : memref<8x8xf32, #tpu.memory_space<vmem>>, vector<8x8xf32>
    %c0_10 = arith.constant 0 : index
    %c0_11 = arith.constant 0 : index
    %15 = vector.load %arg7[%c0_10, %c0_11] : memref<4x32xf32, #tpu.memory_space<vmem>>, vector<4x32xf32>
    %c0_12 = arith.constant 0 : index
    %c0_13 = arith.constant 0 : index
    %16 = vector.load %arg8[%c0_12, %c0_13] : memref<8x32xf32, #tpu.memory_space<vmem>>, vector<8x32xf32>
    %17 = vector.extract_strided_slice %7 {offsets = [0, 0], sizes = [8, 4], strides = [1, 1]} : vector<8x8xf32> to vector<8x4xf32>
    %18 = vector.extract_strided_slice %8 {offsets = [0, 0], sizes = [8, 8], strides = [1, 1]} : vector<8x16xf32> to vector<8x8xf32>
    %19 = arith.mulf %18, %13 : vector<8x8xf32>
    %c4_i32 = arith.constant 4 : i32
    %20 = tpu.dynamic_rotate %18 by %c4_i32 dim 1 : vector<8x8xf32>, i32 -> vector<8x8xf32>
    %21 = arith.mulf %20, %14 : vector<8x8xf32>
    %22 = arith.addf %19, %21 : vector<8x8xf32>
    %cst_14 = arith.constant dense<0.000000e+00> : vector<8x32xf32>
    %23 = tpu.matmul %17, %15, %cst_14 {dimension_numbers = #tpu.dot_dimension_numbers<[1], [0], [0], [1], [0, 0, 1, 1], [], []>} : vector<8x4xf32>, vector<4x32xf32>, vector<8x32xf32> -> vector<8x32xf32>
    %cst_15 = arith.constant dense<0.000000e+00> : vector<8x32xf32>
    %24 = tpu.matmul %22, %16, %cst_15 {dimension_numbers = #tpu.dot_dimension_numbers<[1], [0], [0], [1], [0, 0, 1, 1], [], []>} : vector<8x8xf32>, vector<8x32xf32>, vector<8x32xf32> -> vector<8x32xf32>
    %25 = arith.mulf %23, %24 : vector<8x32xf32>
    %26 = vector.extract_strided_slice %7 {offsets = [0, 4], sizes = [8, 4], strides = [1, 1]} : vector<8x8xf32> to vector<8x4xf32>
    %27 = vector.extract_strided_slice %8 {offsets = [0, 8], sizes = [8, 8], strides = [1, 1]} : vector<8x16xf32> to vector<8x8xf32>
    %28 = arith.mulf %27, %13 : vector<8x8xf32>
    %c4_i32_16 = arith.constant 4 : i32
    %29 = tpu.dynamic_rotate %27 by %c4_i32_16 dim 1 : vector<8x8xf32>, i32 -> vector<8x8xf32>
    %30 = arith.mulf %29, %14 : vector<8x8xf32>
    %31 = arith.addf %28, %30 : vector<8x8xf32>
    %cst_17 = arith.constant dense<0.000000e+00> : vector<8x32xf32>
    %32 = tpu.matmul %26, %15, %cst_17 {dimension_numbers = #tpu.dot_dimension_numbers<[1], [0], [0], [1], [0, 0, 1, 1], [], []>} : vector<8x4xf32>, vector<4x32xf32>, vector<8x32xf32> -> vector<8x32xf32>
    %cst_18 = arith.constant dense<0.000000e+00> : vector<8x32xf32>
    %33 = tpu.matmul %31, %16, %cst_18 {dimension_numbers = #tpu.dot_dimension_numbers<[1], [0], [0], [1], [0, 0, 1, 1], [], []>} : vector<8x8xf32>, vector<8x32xf32>, vector<8x32xf32> -> vector<8x32xf32>
    %34 = arith.mulf %32, %33 : vector<8x32xf32>
    %35 = arith.addf %25, %34 : vector<8x32xf32>
    %cst_19 = arith.constant 0.353553385 : f32
    %36 = vector.broadcast %cst_19 : f32 to vector<8x32xf32>
    %37 = arith.mulf %35, %36 : vector<8x32xf32>
    %c0_20 = arith.constant 0 : index
    %c0_21 = arith.constant 0 : index
    %c0_22 = arith.constant 0 : index
    %38 = vector.load %arg9[%c0_20, %c0_21, %c0_22] : memref<1x8x32xf32, #tpu.memory_space<vmem>>, vector<1x8x32xf32>
    %39 = vector.shape_cast %38 : vector<1x8x32xf32> to vector<8x32xf32>
    %40 = vector.shape_cast %37 : vector<8x32xf32> to vector<1x8x32xf32>
    tpu.vector_store %arg9[%c0_20, %c0_21, %c0_22], %40 {strides = array<i32>} : memref<1x8x32xf32, #tpu.memory_space<vmem>>, vector<1x8x32xf32>,
    %41 = vector.extract_strided_slice %9 {offsets = [0, 0], sizes = [8, 4], strides = [1, 1]} : vector<8x8xf32> to vector<8x4xf32>
    %42 = vector.extract_strided_slice %10 {offsets = [0, 0], sizes = [8, 8], strides = [1, 1]} : vector<8x16xf32> to vector<8x8xf32>
    %43 = arith.mulf %42, %13 : vector<8x8xf32>
    %c4_i32_23 = arith.constant 4 : i32
    %44 = tpu.dynamic_rotate %42 by %c4_i32_23 dim 1 : vector<8x8xf32>, i32 -> vector<8x8xf32>
    %45 = arith.mulf %44, %14 : vector<8x8xf32>
    %46 = arith.addf %43, %45 : vector<8x8xf32>
    %cst_24 = arith.constant dense<0.000000e+00> : vector<8x32xf32>
    %47 = tpu.matmul %41, %15, %cst_24 {dimension_numbers = #tpu.dot_dimension_numbers<[1], [0], [0], [1], [0, 0, 1, 1], [], []>} : vector<8x4xf32>, vector<4x32xf32>, vector<8x32xf32> -> vector<8x32xf32>
    %cst_25 = arith.constant dense<0.000000e+00> : vector<8x32xf32>
    %48 = tpu.matmul %46, %16, %cst_25 {dimension_numbers = #tpu.dot_dimension_numbers<[1], [0], [0], [1], [0, 0, 1, 1], [], []>} : vector<8x8xf32>, vector<8x32xf32>, vector<8x32xf32> -> vector<8x32xf32>
    %49 = arith.mulf %47, %48 : vector<8x32xf32>
    %50 = vector.extract_strided_slice %9 {offsets = [0, 4], sizes = [8, 4], strides = [1, 1]} : vector<8x8xf32> to vector<8x4xf32>
    %51 = vector.extract_strided_slice %10 {offsets = [0, 8], sizes = [8, 8], strides = [1, 1]} : vector<8x16xf32> to vector<8x8xf32>
    %52 = arith.mulf %51, %13 : vector<8x8xf32>
    %c4_i32_26 = arith.constant 4 : i32
    %53 = tpu.dynamic_rotate %51 by %c4_i32_26 dim 1 : vector<8x8xf32>, i32 -> vector<8x8xf32>
    %54 = arith.mulf %53, %14 : vector<8x8xf32>
    %55 = arith.addf %52, %54 : vector<8x8xf32>
    %cst_27 = arith.constant dense<0.000000e+00> : vector<8x32xf32>
    %56 = tpu.matmul %50, %15, %cst_27 {dimension_numbers = #tpu.dot_dimension_numbers<[1], [0], [0], [1], [0, 0, 1, 1], [], []>} : vector<8x4xf32>, vector<4x32xf32>, vector<8x32xf32> -> vector<8x32xf32>
    %cst_28 = arith.constant dense<0.000000e+00> : vector<8x32xf32>
    %57 = tpu.matmul %55, %16, %cst_28 {dimension_numbers = #tpu.dot_dimension_numbers<[1], [0], [0], [1], [0, 0, 1, 1], [], []>} : vector<8x8xf32>, vector<8x32xf32>, vector<8x32xf32> -> vector<8x32xf32>
    %58 = arith.mulf %56, %57 : vector<8x32xf32>
    %59 = arith.addf %49, %58 : vector<8x32xf32>
    %c0_29 = arith.constant 0 : index
    %c0_30 = arith.constant 0 : index
    %c0_31 = arith.constant 0 : index
    %60 = vector.load %arg10[%c0_29, %c0_30, %c0_31] : memref<1x8x32xf32, #tpu.memory_space<vmem>>, vector<1x8x32xf32>
    %61 = vector.shape_cast %60 : vector<1x8x32xf32> to vector<8x32xf32>
    %62 = vector.shape_cast %59 : vector<8x32xf32> to vector<1x8x32xf32>
    tpu.vector_store %arg10[%c0_29, %c0_30, %c0_31], %62 {strides = array<i32>} : memref<1x8x32xf32, #tpu.memory_space<vmem>>, vector<1x8x32xf32>,
    %63 = vector.extract_strided_slice %11 {offsets = [0, 0], sizes = [8, 4], strides = [1, 1]} : vector<8x8xf32> to vector<8x4xf32>
    %64 = vector.extract_strided_slice %12 {offsets = [0, 0], sizes = [8, 8], strides = [1, 1]} : vector<8x16xf32> to vector<8x8xf32>
    %cst_32 = arith.constant dense<0.000000e+00> : vector<8x32xf32>
    %65 = tpu.matmul %63, %15, %cst_32 {dimension_numbers = #tpu.dot_dimension_numbers<[1], [0], [0], [1], [0, 0, 1, 1], [], []>} : vector<8x4xf32>, vector<4x32xf32>, vector<8x32xf32> -> vector<8x32xf32>
    %cst_33 = arith.constant dense<0.000000e+00> : vector<8x32xf32>
    %66 = tpu.matmul %64, %16, %cst_33 {dimension_numbers = #tpu.dot_dimension_numbers<[1], [0], [0], [1], [0, 0, 1, 1], [], []>} : vector<8x8xf32>, vector<8x32xf32>, vector<8x32xf32> -> vector<8x32xf32>
    %67 = arith.mulf %65, %66 : vector<8x32xf32>
    %68 = vector.extract_strided_slice %11 {offsets = [0, 4], sizes = [8, 4], strides = [1, 1]} : vector<8x8xf32> to vector<8x4xf32>
    %69 = vector.extract_strided_slice %12 {offsets = [0, 8], sizes = [8, 8], strides = [1, 1]} : vector<8x16xf32> to vector<8x8xf32>
    %cst_34 = arith.constant dense<0.000000e+00> : vector<8x32xf32>
    %70 = tpu.matmul %68, %15, %cst_34 {dimension_numbers = #tpu.dot_dimension_numbers<[1], [0], [0], [1], [0, 0, 1, 1], [], []>} : vector<8x4xf32>, vector<4x32xf32>, vector<8x32xf32> -> vector<8x32xf32>
    %cst_35 = arith.constant dense<0.000000e+00> : vector<8x32xf32>
    %71 = tpu.matmul %69, %16, %cst_35 {dimension_numbers = #tpu.dot_dimension_numbers<[1], [0], [0], [1], [0, 0, 1, 1], [], []>} : vector<8x8xf32>, vector<8x32xf32>, vector<8x32xf32> -> vector<8x32xf32>
    %72 = arith.mulf %70, %71 : vector<8x32xf32>
    %73 = arith.addf %67, %72 : vector<8x32xf32>
    %c0_36 = arith.constant 0 : index
    %c0_37 = arith.constant 0 : index
    %c0_38 = arith.constant 0 : index
    %74 = vector.load %arg11[%c0_36, %c0_37, %c0_38] : memref<1x8x32xf32, #tpu.memory_space<vmem>>, vector<1x8x32xf32>
    %75 = vector.shape_cast %74 : vector<1x8x32xf32> to vector<8x32xf32>
    %76 = vector.shape_cast %73 : vector<8x32xf32> to vector<1x8x32xf32>
    tpu.vector_store %arg11[%c0_36, %c0_37, %c0_38], %76 {strides = array<i32>} : memref<1x8x32xf32, #tpu.memory_space<vmem>>, vector<1x8x32xf32>,
    return
  }
  func.func @transform_0(%arg0: i32, %arg1: i32) -> (i32, i32, i32) {
    %c0_i32 = arith.constant 0 : i32
    %c0_i32_0 = arith.constant 0 : i32
    return %arg0, %arg1, %c0_i32 : i32, i32, i32
  }
  func.func @transform_1(%arg0: i32, %arg1: i32) -> (i32, i32) {
    %c0_i32 = arith.constant 0 : i32
    %c0_i32_0 = arith.constant 0 : i32
    %c0_i32_1 = arith.constant 0 : i32
    return %c0_i32, %c0_i32_0 : i32, i32
  }
  func.func @transform_2(%arg0: i32, %arg1: i32) -> (i32, i32) {
    %c0_i32 = arith.constant 0 : i32
    %c0_i32_0 = arith.constant 0 : i32
    %c0_i32_1 = arith.constant 0 : i32
    return %c0_i32, %c0_i32_0 : i32, i32
  }
  func.func @transform_3(%arg0: i32, %arg1: i32) -> (i32, i32) {
    %c0_i32 = arith.constant 0 : i32
    %c0_i32_0 = arith.constant 0 : i32
    return %arg1, %c0_i32 : i32, i32
  }
  func.func @transform_4(%arg0: i32, %arg1: i32) -> (i32, i32) {
    %c0_i32 = arith.constant 0 : i32
    %c0_i32_0 = arith.constant 0 : i32
    return %arg1, %c0_i32 : i32, i32
  }
  func.func @transform_5(%arg0: i32, %arg1: i32) -> (i32, i32) {
    %c0_i32 = arith.constant 0 : i32
    %c0_i32_0 = arith.constant 0 : i32
    %c0_i32_1 = arith.constant 0 : i32
    return %c0_i32, %c0_i32_0 : i32, i32
  }
  func.func @transform_6(%arg0: i32, %arg1: i32) -> (i32, i32) {
    %c0_i32 = arith.constant 0 : i32
    %c0_i32_0 = arith.constant 0 : i32
    %c0_i32_1 = arith.constant 0 : i32
    return %c0_i32, %c0_i32_0 : i32, i32
  }
  func.func @transform_7(%arg0: i32, %arg1: i32) -> (i32, i32, i32) {
    %c0_i32 = arith.constant 0 : i32
    %c0_i32_0 = arith.constant 0 : i32
    return %arg0, %arg1, %c0_i32 : i32, i32, i32
  }
  func.func @transform_8(%arg0: i32, %arg1: i32) -> (i32, i32, i32) {
    %c0_i32 = arith.constant 0 : i32
    %c0_i32_0 = arith.constant 0 : i32
    return %arg0, %arg1, %c0_i32 : i32, i32, i32
  }
  func.func @transform_9(%arg0: i32, %arg1: i32) -> (i32, i32, i32) {
    %c0_i32 = arith.constant 0 : i32
    %c0_i32_0 = arith.constant 0 : i32
    return %arg0, %arg1, %c0_i32 : i32, i32, i32
  }
}

</mosaic_0001>

<bundles_post_ra>
// kernel: tpu_custom_call.1
= control target key start
LH: loop header
LB: loop body
LE: loop exit
PB: predicated region body
PF: predicated region fallthrough
CT: control target
= control target key end

     0   :  { %s3092_s0 = inlined_call_operand.hbm [shape: f32[2,8,32], index: 0, kind: input, shape index: {}]   ;;  %s3093_s1 = inlined_call_operand.hbm [shape: f32[32,72], index: 1, kind: input, shape index: {}]   ;;  %s3094_s2 = inlined_call_operand.hbm [shape: f32[1,72], index: 2, kind: input, shape index: {}]   ;;  %s3095_s3 = inlined_call_operand.hbm [shape: f32[8,8], index: 3, kind: input, shape index: {}]   ;;  %s3096_s4 = inlined_call_operand.hbm [shape: f32[8,8], index: 4, kind: input, shape index: {}]   ;;  %s3097_s5 = inlined_call_operand.hbm [shape: f32[4,32], index: 5, kind: input, shape index: {}]   ;;  %s3098_s6 = inlined_call_operand.hbm [shape: f32[8,32], index: 6, kind: input, shape index: {}]   ;;  %s3099_s7 = inlined_call_operand.hbm [shape: f32[2,8,32], index: 7, kind: output, shape index: {0}]   ;;  %s3100_s8 = inlined_call_operand.hbm [shape: f32[2,8,32], index: 8, kind: output, shape index: {1}]   ;;  %s3101_s9 = inlined_call_operand.hbm [shape: f32[2,8,32], index: 9, kind: output, shape index: {2}]  }
   0x1   :  { %3110 = sst [smem:[#allocation24_spill]] %s3093_s1 }
   0x2   :  { %3111 = sst [smem:[#allocation25_spill]] %s3099_s7 }
   0x3   :  { %3112 = sst [smem:[#allocation26_spill]] %s3100_s8 }
   0x4   :  { %3113 = sst [smem:[#allocation27_spill]] %s3101_s9 }
   0x5   :  { %15 = vsyncpa [#allocation3], 0 }
   0x6   :  { %17 = vsyncpa [#allocation3 + $0x1], 0 }
   0x7   :  { %18 = vsyncpa [#allocation6], 0 }
   0x8   :  { %19 = vsyncpa [#allocation9], 0 }
   0x9   :  { %20 = vsyncpa [#allocation12], 0 }
   0xa   :  { %21 = vsyncpa [#allocation4], 0 }
   0xb   :  { %23 = vsyncpa [#allocation4 + $0x1], 0 }
   0xc   :  { %24 = vsyncpa [#allocation16], 0 }
   0xd   :  { %26 = vsyncpa [#allocation16 + $0x1], 0  ;;  %s2569_s30 = smov 0   ;;  %s2571_s10 = smov 0  }
   0xe   :  { %s2573_s11 = smov 0   ;;  %s2575_s12 = smov 0  }
   0xf   :  { %s2577_s13 = smov 0   ;;  %s2579_s14 = smov 0  }
  0x10 LB: > { %s2600_s15 = sadd.s32 4294967295, %s2483_s14   ;;  %p1819_p0 = scmp.ge.s32.totalorder %s2483_s14, 1  ;;  %s2483_s14 = sphi %s2579_s14, %s32_s14   ;;  %s2479_s13 = sphi %s2577_s13, %s3145_s13   ;;  %s2475_s12 = sphi %s2575_s12, %s3144_s12   ;;  %s2471_s11 = sphi %s2573_s11, %s3143_s11   ;;  %s2467_s10 = sphi %s2571_s10, %s3142_s10   ;;  %s2463_s30 = sphi %s2569_s30, %s3141_s30  }
  0x11   : > { %p3105_p1 = scmp.eq.s32.totalorder %s2600_s15, 0  ;;  %p297_p2 = scmp.lt.s32.totalorder %s2483_s14, 3 }
  0x12   : > { %s2485_s17 = smov [#allocation5]   ;;  %s2486_s20 = smov [#allocation8]  }
  0x13   : > { %p2605_p3 = pnand %p1819_p0, %p297_p2  ;;  %s309_s18 = sshll.u32 %s2485_s17, 4  ;;  %s2609_s18 = int_to_ptr.vmem [resolvable:$true] %s309_s18 }
  0x14   : > { %s336_s21 = sshll.u32 %s2486_s20, 4  ;;  %s2487_s22 = smov [#allocation11]   ;;  %s2620_s21 = int_to_ptr.vmem [resolvable:$true] %s336_s21 }
  0x15   : > { %s3114_s16 = scalar_select %p2605_p3, 1, 0 }
  0x16   : > { %p2006_p4 = pneg %p2605_p3  ;;  %s2622_s23 = sshll.u32 %s2487_s22, 4  ;;  %s361_s23 = int_to_ptr.vmem [resolvable:$true] %s2622_s23 }
  0x17   : > { %s3116_s1 = sld [smem:[#allocation24_spill]] }
  0x18   : > { %p2616_p6 = pnand %p2006_p4, %p3105_p1 }
  0x1a   : > { %p2632_p8 = pneg %p2616_p6 }
  0x1d   : > { %s2131_s26 = scalar_lea.hbm %s3116_s1, 512 }
  0x1e   : > { %p2132_p7 = scmp.ne.s32.totalorder %s3116_s1, %s2131_s26  ;;  %p2138_p11 = scmp.lt.u32.totalorder %s2131_s26, %s3116_s1 }
  0x20   : > { %p2134_p9 = pnand %p2632_p8, %p2132_p7 }
  0x22   : > { %p2135_p10 = pneg %p2134_p9 }
  0x24   : > { %p2140_p12 = pnand %p2138_p11, %p2135_p10 }
  0x26   : > { %2143 = shalt.err (!%p2140_p12)
}
  0x27   : > { %s2144_s22 = scalar_lea.vmem %s2609_s18, 512  ;;  %p2152_p4 = scmp.lt.s32.totalorder %s2609_s18, %s2609_s18 }
  0x28   : > { %p2145_p13 = scmp.ne.s32.totalorder %s2609_s18, %s2144_s22  ;;  %p2153_p5 = scmp.lt.s32.totalorder %s2144_s22, %s2144_s22 }
  0x2a   : > { %p2147_p0 = pnand %p2145_p13, %p2632_p8  ;;  %p2154_p7 = por %p2153_p5, %p2152_p4 }
  0x2c   : > { %p2148_p2 = pneg %p2147_p0 }
  0x2e   : > { %p2155_p9 = pnand %p2154_p7, %p2148_p2 }
  0x30   : > { %2158 = shalt.err (!%p2155_p9)
}
  0x31   : > { %s2488_s24 = smov 128   ;;  %s2489_s25 = smov 8  }
  0x32   : > { %2009 = dma.hbm_to_vmem [thread:$0]  (!%p2616_p6), %s3116_s1, 512, %s2609_s18, [#allocation6], %s2488_s24, %s2488_s24, %s2489_s25  }
  0x33   : > { %s2159_s20 = scalar_lea.hbm %s3095_s3, 128 }
  0x34   : > { %p2160_p5 = scmp.ne.s32.totalorder %s3095_s3, %s2159_s20  ;;  %p2166_p12 = scmp.lt.u32.totalorder %s2159_s20, %s3095_s3 }
  0x36   : > { %p2162_p10 = pnand %p2160_p5, %p2632_p8 }
  0x38   : > { %p2163_p11 = pneg %p2162_p10 }
  0x3a   : > { %p2168_p13 = pnand %p2166_p12, %p2163_p11 }
  0x3c   : > { %2171 = shalt.err (!%p2168_p13)
}
  0x3d   : > { %s2172_s18 = scalar_lea.vmem %s2620_s21, 128  ;;  %p2180_p7 = scmp.lt.s32.totalorder %s2620_s21, %s2620_s21 }
  0x3e   : > { %p2173_p0 = scmp.ne.s32.totalorder %s2620_s21, %s2172_s18  ;;  %p2181_p9 = scmp.lt.s32.totalorder %s2172_s18, %s2172_s18 }
  0x40   : > { %p2175_p2 = pnand %p2173_p0, %p2632_p8  ;;  %p2182_p5 = por %p2181_p9, %p2180_p7 }
  0x42   : > { %p2176_p4 = pneg %p2175_p2 }
  0x44   : > { %p2183_p10 = pnand %p2182_p5, %p2176_p4 }
  0x46   : > { %2186 = shalt.err (!%p2183_p10)
}
  0x47   : > { %2015 = dma.hbm_to_vmem [thread:$0]  (!%p2616_p6), %s3095_s3, 128, %s2620_s21, [#allocation9]  }
  0x48   : > { %s2187_s25 = scalar_lea.hbm %s3097_s5, 64 }
  0x49   : > { %p2188_p11 = scmp.ne.s32.totalorder %s3097_s5, %s2187_s25  ;;  %p2194_p0 = scmp.lt.u32.totalorder %s2187_s25, %s3097_s5 }
  0x4b   : > { %p2190_p12 = pnand %p2188_p11, %p2632_p8 }
  0x4d   : > { %p2191_p13 = pneg %p2190_p12 }
  0x4f   : > { %p2196_p2 = pnand %p2194_p0, %p2191_p13 }
  0x51   : > { %2199 = shalt.err (!%p2196_p2)
}
  0x52   : > { %s2200_s20 = scalar_lea.vmem %s361_s23, 64  ;;  %p2208_p5 = scmp.lt.s32.totalorder %s361_s23, %s361_s23 }
  0x53   : > { %p2201_p4 = scmp.ne.s32.totalorder %s361_s23, %s2200_s20  ;;  %p2209_p10 = scmp.lt.s32.totalorder %s2200_s20, %s2200_s20 }
  0x55   : > { %p2203_p7 = pnand %p2201_p4, %p2632_p8  ;;  %p2210_p1 = por %p2209_p10, %p2208_p5 }
  0x57   : > { %p2204_p9 = pneg %p2203_p7 }
  0x59   : > { %p2211_p3 = pnand %p2210_p1, %p2204_p9 }
  0x5b   : > { %2214 = shalt.err (!%p2211_p3)
}
  0x5c   : > { %2021 = dma.hbm_to_vmem [thread:$0]  (!%p2616_p6), %s3097_s5, 64, %s361_s23, [#allocation12]  }
  0x5d   : > { %s2490_s18 = smov [#allocation7]   ;;  %s2491_s8 = smov [#allocation10]  }
  0x5e   : > { %s323_s7 = sshll.u32 %s2490_s18, 4  ;;  %s349_s9 = sshll.u32 %s2491_s8, 4  ;;  %s324_s7 = int_to_ptr.vmem [resolvable:$true] %s323_s7  ;;  %s350_s9 = int_to_ptr.vmem [resolvable:$true] %s349_s9 }
  0x5f   : > { %s2215_s26 = scalar_lea.hbm %s3094_s2, 16 }
  0x60   : > { %p2216_p1 = scmp.ne.s32.totalorder %s3094_s2, %s2215_s26  ;;  %p2222_p12 = scmp.lt.u32.totalorder %s2215_s26, %s3094_s2 }
  0x62   : > { %p2218_p3 = pnand %p2216_p1, %p2632_p8 }
  0x64   : > { %p2219_p11 = pneg %p2218_p3 }
  0x66   : > { %p2224_p13 = pnand %p2222_p12, %p2219_p11 }
  0x68   : > { %2227 = shalt.err (!%p2224_p13)
}
  0x69   : > { %s2228_s23 = scalar_lea.vmem %s324_s7, 16  ;;  %s2235_s21 = scalar_lea.vmem %s324_s7, 32 }
  0x6a   : > { %p2229_p0 = scmp.ne.s32.totalorder %s324_s7, %s2228_s23  ;;  %p2236_p7 = scmp.lt.s32.totalorder %s324_s7, %s324_s7 }
  0x6b   : > { %p2237_p9 = scmp.lt.s32.totalorder %s2235_s21, %s2228_s23 }
  0x6c   : > { %p2231_p2 = pnand %p2229_p0, %p2632_p8 }
  0x6d   : > { %p2238_p5 = por %p2237_p9, %p2236_p7 }
  0x6e   : > { %p2232_p4 = pneg %p2231_p2 }
  0x70   : > { %p2239_p10 = pnand %p2238_p5, %p2232_p4 }
  0x72   : > { %2242 = shalt.err (!%p2239_p10)
}
  0x73   : > { %2012 = dma.hbm_to_vmem [thread:$0]  (!%p2616_p6), %s3094_s2, 16, %s324_s7, [#allocation6]  }
  0x74   : > { %s2243_s25 = scalar_lea.hbm %s3096_s4, 128 }
  0x75   : > { %p2244_p1 = scmp.ne.s32.totalorder %s3096_s4, %s2243_s25  ;;  %p2250_p12 = scmp.lt.u32.totalorder %s2243_s25, %s3096_s4 }
  0x77   : > { %p2246_p3 = pnand %p2244_p1, %p2632_p8 }
  0x79   : > { %p2247_p11 = pneg %p2246_p3 }
  0x7b   : > { %p2252_p13 = pnand %p2250_p12, %p2247_p11 }
  0x7d   : > { %2255 = shalt.err (!%p2252_p13)
}
  0x7e   : > { %s2256_s20 = scalar_lea.vmem %s350_s9, 128  ;;  %p2264_p7 = scmp.lt.s32.totalorder %s350_s9, %s350_s9 }
  0x7f   : > { %p2257_p0 = scmp.ne.s32.totalorder %s350_s9, %s2256_s20  ;;  %p2265_p9 = scmp.lt.s32.totalorder %s2256_s20, %s2256_s20 }
  0x81   : > { %p2259_p2 = pnand %p2257_p0, %p2632_p8  ;;  %p2266_p5 = por %p2265_p9, %p2264_p7 }
  0x83   : > { %p2260_p4 = pneg %p2259_p2 }
  0x85   : > { %p2267_p10 = pnand %p2266_p5, %p2260_p4 }
  0x87   : > { %2270 = shalt.err (!%p2267_p10)
}
  0x88   : > { %2018 = dma.hbm_to_vmem [thread:$0]  (!%p2616_p6), %s3096_s4, 128, %s350_s9, [#allocation9]  }
  0x89   : > { %s2492_s21 = smov [#allocation13]   ;;  %s2271_s24 = scalar_lea.hbm %s3098_s6, 128 }
  0x8a   : > { %s371_s22 = sshll.u32 %s2492_s21, 4  ;;  %p2272_p1 = scmp.ne.s32.totalorder %s3098_s6, %s2271_s24  ;;  %s372_s22 = int_to_ptr.vmem [resolvable:$true] %s371_s22 }
  0x8b   : > { %p2278_p12 = scmp.lt.u32.totalorder %s2271_s24, %s3098_s6 }
  0x8c   : > { %p2274_p3 = pnand %p2272_p1, %p2632_p8 }
  0x8e   : > { %p2275_p11 = pneg %p2274_p3 }
  0x90   : > { %p2280_p13 = pnand %p2278_p12, %p2275_p11 }
  0x92   : > { %2283 = shalt.err (!%p2280_p13)
}
  0x93   : > { %s2284_s9 = scalar_lea.vmem %s372_s22, 128  ;;  %p2292_p7 = scmp.lt.s32.totalorder %s372_s22, %s372_s22 }
  0x94   : > { %p2285_p0 = scmp.ne.s32.totalorder %s372_s22, %s2284_s9  ;;  %p2293_p9 = scmp.lt.s32.totalorder %s2284_s9, %s2284_s9 }
  0x96   : > { %p2287_p2 = pnand %p2285_p0, %p2632_p8  ;;  %p2294_p5 = por %p2293_p9, %p2292_p7 }
  0x98   : > { %p2288_p4 = pneg %p2287_p2 }
  0x9a   : > { %p2295_p10 = pnand %p2294_p5, %p2288_p4 }
  0x9c   : > { %2298 = shalt.err (!%p2295_p10)
}
  0x9d   : > { %2024 = dma.hbm_to_vmem [thread:$0]  (!%p2616_p6), %s3098_s6, 128, %s372_s22, [#allocation12]  }
  0x9e   : > { %s3107_s29 = sadd.s32 4294967294, %s2483_s14   ;;  %s44_s7 = sadd.s32 1, %s2479_s13 }
  0x9f   : > { %p46_p8 = scmp.ge.s32.totalorder %s44_s7, 2  ;;  %s53_s19 = sadd.s32 1, %s2471_s11 }
  0xa0   : > { %p60_p1 = scmp.ne.s32.totalorder %s2471_s11, %s2467_s10  ;;  %p61_p3 = scmp.eq.s32.totalorder %s2483_s14, 0 }
  0xa1   : > { %s3147_s7 = smov (%p46_p8, %s44_s7), 0  ;;  %p66_p12 = scmp.ne.s32.totalorder %s2467_s10, %s2463_s30 }
  0xa2   : > { %p2757_p11 = por %p61_p3, %p60_p1  ;;  %s48_s21 = ssub.s32 %s2479_s13, %s3147_s7 }
  0xa3   : > { %p228_p6 = scmp.eq.s32.totalorder %s2600_s15, 1  ;;  %p51_p13 = scmp.eq.s32.totalorder %s48_s21, 0 }
  0xa4   : > { %p3119_p0 = scmp.eq.s32.totalorder %s2600_s15, 0  ;;  %p234_p7 = scmp.eq.s32.totalorder %s3107_s29, 1 }
  0xa5   : > { %p2772_p4 = por %p228_p6, %p60_p1  ;;  %p2045_p5 = scmp.lt.s32.totalorder %s2483_s14, 2 }
  0xa6   : > { %p2768_p2 = por %p3119_p0, %p66_p12  ;;  %p2781_p9 = por %p234_p7, %p66_p12 }
  0xa7   : > { %s3121_s18 = scalar_select %p2772_p4, 1, 0 }
  0xa8   : > { %s2779_s8 = scalar_select %p51_p13, %s2471_s11, %s53_s19  }
  0xa9   : > { %s3122_s24 = scalar_select %p2781_p9, 1, 0 }
  0xaa   : > { %s382_s25 = sand.u32 1, %s2471_s11   ;;  %s1828_s26 = sshll.u32 %s2479_s13, 7 }
  0xab   : > { %s1827_s27 = sshll.u32 %s382_s25, 3  ;;  %s2791_s17 = scalar_lea.hbm %s3092_s0, %s1828_s26 }
  0xac   : > { %s386_s20 = scalar_lea.vmem [#allocation2], %s1827_s27  ;;  %p2795_p10 = pnand %p2045_p5, %p2757_p11 }
  0xad   : > { %s394_s19 = sshll.u32 %s386_s20, 4  ;;  %s383_s29 = scalar_lea.sflag [#allocation3], %s382_s25  ;;  %s2799_s19 = int_to_ptr.vmem [resolvable:$true] %s394_s19 }
  0xae   : > { %s2299_s1 = scalar_lea.hbm %s2791_s17, 128  ;;  %p2301_p1 = pneg %p2795_p10 }
  0xaf   : > { %p2300_p8 = scmp.ne.s32.totalorder %s2791_s17, %s2299_s1  ;;  %s2304_s23 = scalar_lea.hbm %s3092_s0, 256 }
  0xb0   : > { %p2305_p11 = scmp.lt.u32.totalorder %s2791_s17, %s3092_s0  ;;  %p2306_p6 = scmp.lt.u32.totalorder %s2304_s23, %s2299_s1 }
  0xb1   : > { %p2302_p3 = pnand %p2301_p1, %p2300_p8  ;;  %p2308_p0 = scmp.lt.u32.totalorder %s2299_s1, %s2791_s17 }
  0xb2   : > { %p2307_p13 = por %p2306_p6, %p2305_p11 }
  0xb3   : > { %p2303_p12 = pneg %p2302_p3 }
  0xb4   : > { %p2309_p7 = por %p2308_p0, %p2307_p13 }
  0xb6   : > { %p2310_p5 = pnand %p2309_p7, %p2303_p12 }
  0xb8   : > { %2313 = shalt.err (!%p2310_p5)
}
  0xb9   : > { %s2314_s25 = scalar_lea.vmem %s2799_s19, 128  ;;  %s2493_s20 = smov [#allocation2]  }
  0xba   : > { %p2315_p8 = scmp.ne.s32.totalorder %s2799_s19, %s2314_s25  ;;  %s2319_s26 = sshll.u32 %s2493_s20, 4  ;;  %s2320_s26 = int_to_ptr.vmem [resolvable:$false] %s2319_s26 }
  0xbb   : > { %s2321_s27 = scalar_lea.vmem %s2320_s26, 256  ;;  %p2322_p4 = scmp.lt.s32.totalorder %s2799_s19, %s2320_s26 }
  0xbc   : > { %p2317_p3 = pnand %p2315_p8, %p2301_p1  ;;  %p2323_p11 = scmp.lt.s32.totalorder %s2321_s27, %s2314_s25 }
  0xbe   : > { %p2318_p9 = pneg %p2317_p3  ;;  %p2324_p6 = por %p2323_p11, %p2322_p4 }
  0xc0   : > { %p2325_p13 = pnand %p2324_p6, %p2318_p9 }
  0xc2   : > { %2328 = shalt.err (!%p2325_p13)
}
  0xc3   : > { %2028 = dma.hbm_to_vmem [thread:$0]  (!%p2795_p10), %s2791_s17, 128, %s2799_s19, %s383_s29  }
  0xc4   : > { %p3124_p12 = scmp.ne.s32.totalorder %s3114_s16, 0 }
  0xc5   : > { %s2829_s1 = sand.u32 (!%p3124_p12), 1, %s2467_s10  }
  0xc6   : > { %403 = sbr.rel (%p3124_p12) target bundleno = 1308 (0x51c), region = 48  ;;  %s2832_s23 = sshll.u32 (!%p3124_p12), %s2829_s1, 3 }
  0xc7   : > { %s406_s28 = scalar_lea.sflag (!%p3124_p12), [#allocation3], %s2829_s1  ;;  %s409_s9 = scalar_lea.vmem (!%p3124_p12), [#allocation2], %s2832_s23 }
  0xcd   : > { %2438 = dma.done.wait (%p2768_p2), %s406_s28, 128  }
  0xce   : > { %2440 = vsyncadd (%p2768_p2), %s406_s28, 4294967168  ;;  %p3125_p4 = scmp.eq.s32.totalorder %s2600_s15, 0 }
  0xd0   : > { %2442 = dma.done.wait (%p3125_p4), [#allocation6], 528   ;;  %p3126_p9 = pmov %p3125_p4 }
  0xd1   : > { %p3127_p10 = pmov %p3125_p4 }
  0xd2   : > { %2444 = vsyncadd (%p3126_p9), [#allocation6], 4294966768 }
  0xd3   : > { %2446 = dma.done.wait (%p3127_p10), [#allocation9], 256   ;;  %p3128_p1 = pmov %p3125_p4 }
  0xd5   : > { %2448 = vsyncadd (%p3128_p1), [#allocation9], 4294967040  ;;  %p3129_p0 = pmov %p3128_p1 }
  0xd7   : > { %2450 = dma.done.wait (%p3129_p0), [#allocation12], 192   ;;  %p3130_p7 = pmov %p3129_p0 }
  0xd8   : > { %v2494_v0 = vmov 0.0|0.0   ;;  %vm2495_vm0 = vmmov 0   ;;  %v2496_v1 = vmov 0.0   ;;  %v479_v2 = vld [vmem:[#allocation5] sm:$0xff]  ;;  %v480_v3 = vld [vmem:[#allocation5 + $0x8] sm:$0xff]  ;;  %v481_v4 = vld [vmem:[#allocation5 + $0x10] sm:$0xff] }
  0xd9   : > { %2452 = vsyncadd (%p3130_p7), [#allocation12], 4294967104  ;;  %1968 = vmatprep.subr.bf16.mxu0 %v2494_v0  ;;  %1905 = vmatprep.mubr.msk.f32.mxu0 %vm2495_vm0, %v2496_v1  ;;  %v1969_v5 = vpack.c.bf16 %v480_v3, %v479_v2  ;;  %v482_v6 = vld [vmem:[#allocation5 + $0x18] sm:$0xff]  ;;  %vm490_vm1 = vcmask 261120   ;;  %v2861_v9 = vld [vmem:[#allocation11] sm:$0xf] }
  0xda   : > { %1908 = vmatprep.subr.mxu1 %v2496_v1  ;;  %1910 = vmatprep.mubr.msk.f32.mxu1 %vm2495_vm0, %v2496_v1  ;;  %v1972_v7 = vpack.c.bf16 %v482_v6, %v481_v4  ;;  %v478_v8 = vld [vmem:[%s409_s9] sm:$0xff]  ;;  %vm597_vm2 = vcmask 1043456   ;;  %v1840_v10 = vld [vmem:[#allocation7] ss:$0 sm:$0xff]  ;;  %vm594_vm3 = vcmask 31744   ;;  %s2497_s16 = smov 96  }
  0xdb   : > { %1970 = vmatpush3.bf16.msra.mxu0 %v1969_v5  ;;  %1909 = vmatpush3.msk.msra.mxu1 %vm597_vm2, %v2861_v9  ;;  %s2498_s29 = smov 120   ;;  %s2499_s22 = smov 88   ;;  %v565_v18 = vld [vmem:[#allocation10] sm:$0xff]  ;;  %vm577_vm4 = vcmask 1047616   ;;  %v564_v27 = vld [vmem:[#allocation8] sm:$0xff]  ;;  %v2891_v43 = vld [vmem:[#allocation13] sm:$0xff] }
  0xdc   : > { %1971 = vmatprep.subr.bf16.mxu0 %v2494_v0  ;;  %1913 = vmatprep.subr.mxu1 %v2496_v1  ;;  %s2500_s17 = smov 112   ;;  %s2501_s19 = smov 8   ;;  %vm674_vm5 = vcmask 64512  }
  0xdd   : > { %s2502_s21 = smov 4   ;;  %s2503_s25 = smov 16  }
  0xde   : > { %s2504_s20 = smov 32   ;;  %s2505_s26 = smov 40  }
  0xdf   : > { %1973 = vmatpush3.bf16.msra.mxu0 %v1972_v7  ;;  %s2506_s27 = smov 12   ;;  %s2507_s28 = smov 28  }
  0xe0   : > { %1923 = vmatprep.subr.mxu0 %v2496_v1  ;;  %s2508_s9 = smov 36   ;;  %p3132_p5 = scmp.ne.s32.totalorder %s3121_s18, 0 }
  0xe2   : > { %1906 = vmatmul.mubr.msk.f32.vlgmr.msra.gmra.mrb[0].mxu0 %vm490_vm1, %v478_v8 }
  0xe3   : > { %1925 = vmatprep.mubr.msk.f32.mxu0 %vm2495_vm0, %v2496_v1  ;;  %1924 = vmatpush3.msra.mxu0 %v2891_v43 }
  0xe4   : > { %1933 = vmatprep.subr.mxu0 %v2496_v1 }
 0x1b5   : > { %v560_v11 = vpop.f32.mrb[0].mxu0 }
 0x1b6   : > { %v2866_v12 = vadd.f32 %v1840_v10, %v560_v11  ;;  %v1907_v13 = vpop.f32.mrb[1].mxu0 }
 0x1b8   : > { %924 = vrot.lane.b32.xlu1 %v2866_v12, %s2497_s16  ;;  %574 = vrot.lane.b32.xlu0 %v2866_v12, %s2498_s29 }
 0x1b9   : > { %1911 = vmatmul.mubr.msk.f32.vlgmr.msra.gmra.mrb[0].mxu1 %vm594_vm3, %v2866_v12 }
 0x1ba   : > { %1915 = vmatprep.mubr.msk.f32.mxu1 %vm2495_vm0, %v2496_v1  ;;  %1914 = vmatpush3.msra.mxu1 %v2891_v43 }
 0x1bb   : > { %1918 = vmatprep.subr.mxu1 %v2496_v1 }
 0x1bc   : > { %1093 = vrot.lane.b32.xlu1 %v2866_v12, %s2499_s22  ;;  %752 = vrot.lane.b32.xlu0 %v2866_v12, %s2500_s17 }
 0x22a   : > { %v575_v14 = vpop.permute.xlu0 %574  ;;  %v925_v15 = vpop.permute.xlu1 %924 }
 0x22b   : > { %578 = vrot.lane.b32.xlu0 %v575_v14, %s2501_s19 }
 0x22e   : > { %v753_v16 = vpop.permute.xlu0 %752  ;;  %v1094_v17 = vpop.permute.xlu1 %1093 }
 0x22f   : > { %927 = vrot.lane.b32.xlu0 %v925_v15, %s2501_s19  ;;  %755 = vrot.lane.b32.xlu1 %v753_v16, %s2501_s19 }
 0x233   : > { %1096 = vrot.lane.b32.xlu1 %v1094_v17, %s2501_s19 }
 0x237   : > { %585 = vrot.lane.b32.xlu1 %v565_v18, %s2502_s21 }
 0x28c   : > { %v2880_v19 = vpop.f32.mrb[0].mxu1 }
 0x28d   : > { %v1912_v20 = vpop.f32.mrb[1].mxu1 }
 0x29d   : > { %v579_v21 = vpop.permute.xlu0 %578 }
 0x29e   : > { %v580_v22 = vsel %vm577_vm4, %v579_v21, %v575_v14 }
 0x29f   : > { %581 = vrot.lane.b32.xlu0 %v580_v22, %s2501_s19 }
 0x2a1   : > { %v756_v23 = vpop.permute.xlu1 %755  ;;  %v928_v24 = vpop.permute.xlu0 %927 }
 0x2a2   : > { %v757_v25 = vsel %vm577_vm4, %v756_v23, %v753_v16  ;;  %v929_v26 = vsel %vm577_vm4, %v928_v24, %v925_v15 }
 0x2a3   : > { %758 = vrot.lane.b32.xlu0 %v757_v25, %s2501_s19  ;;  %930 = vrot.lane.b32.xlu1 %v929_v26, %s2501_s19 }
 0x2a5   : > { %v1097_v28 = vpop.permute.xlu1 %1096 }
 0x2a6   : > { %v1098_v29 = vsel %vm577_vm4, %v1097_v28, %v1094_v17 }
 0x2a7   : > { %1099 = vrot.lane.b32.xlu0 %v1098_v29, %s2501_s19  ;;  %569 = vrot.lane.b32.xlu1 %v564_v27, %s2501_s19  ;;  %s2509_s19 = smov 124  }
 0x2a9   : > { %v586_v30 = vpop.permute.xlu1 %585 }
 0x2ab   : > { %748 = vrot.lane.b32.xlu1 %v564_v27, %s2503_s25  ;;  %s2511_s25 = smov 100  }
 0x2af   : > { %920 = vrot.lane.b32.xlu1 %v564_v27, %s2504_s20  ;;  %s2512_s20 = smov 80  }
 0x2b3   : > { %1089 = vrot.lane.b32.xlu1 %v564_v27, %s2505_s26  ;;  %s2513_s26 = smov 76  }
 0x311   : > { %v582_v31 = vpop.permute.xlu0 %581 }
 0x312   : > { %v583_v32 = vsel %vm577_vm4, %v582_v31, %v575_v14 }
 0x313   : > { %v588_v33 = vmul.f32 %v586_v30, %v583_v32 }
 0x315   : > { %v931_v34 = vpop.permute.xlu1 %930  ;;  %590 = vrot.lane.b32.xlu0 %v588_v33, %s2502_s21  ;;  %v759_v35 = vpop.permute.xlu0 %758  ;;  %s2510_s21 = smov 104  }
 0x316   : > { %v760_v36 = vsel %vm577_vm4, %v759_v35, %v753_v16  ;;  %v932_v38 = vsel %vm577_vm4, %v931_v34, %v925_v15 }
 0x317   : > { %v761_v37 = vmul.f32 %v760_v36, %v586_v30  ;;  %v933_v40 = vmul.f32 %v932_v38, %v586_v30 }
 0x319   : > { %763 = vrot.lane.b32.xlu0 %v761_v37, %s2506_s27  ;;  %v1100_v39 = vpop.permute.xlu0 %1099  ;;  %v570_v44 = vpop.permute.xlu1 %569  ;;  %s2514_s27 = smov 72  }
 0x31a   : > { %v1101_v41 = vsel %vm577_vm4, %v1100_v39, %v1094_v17  ;;  %v572_v46 = vmul.f32 %v570_v44, %v2866_v12 }
 0x31b   : > { %v1102_v42 = vmul.f32 %v1101_v41, %v586_v30 }
 0x31d   : > { %935 = vrot.lane.b32.xlu0 %v933_v40, %s2507_s28  ;;  %v749_v45 = vpop.permute.xlu1 %748 }
 0x31e   : > { %v751_v50 = vmul.f32 %v749_v45, %v2866_v12 }
 0x321   : > { %1104 = vrot.lane.b32.xlu0 %v1102_v42, %s2508_s9  ;;  %v921_v49 = vpop.permute.xlu1 %920 }
 0x322   : > { %v923_v53 = vmul.f32 %v921_v49, %v2866_v12 }
 0x325   : > { %767 = vrot.lane.b32.xlu0 %v2866_v12, %s2509_s19  ;;  %v1090_v54 = vpop.permute.xlu1 %1089  ;;  %s3131_s19 = sld [smem:[#allocation25_spill]] }
 0x326   : > { %v1092_v57 = vmul.f32 %v1090_v54, %v2866_v12 }
 0x329   : > { %939 = vrot.lane.b32.xlu0 %v2866_v12, %s2510_s21 }
 0x32d   : > { %1108 = vrot.lane.b32.xlu0 %v2866_v12, %s2511_s25  ;;  %s3109_s25 = scalar_lea.vmem [#allocation15], %s2832_s23 }
 0x331   : > { %1260 = vrot.lane.b32.xlu0 %v2866_v12, %s2512_s20  ;;  %s2978_s20 = sshll.u32 %s3109_s25, 4  ;;  %s3010_s20 = int_to_ptr.vmem [resolvable:$true] %s2978_s20 }
 0x335   : > { %1409 = vrot.lane.b32.xlu0 %v2866_v12, %s2513_s26  ;;  %s1561_s26 = scalar_lea.sflag [#allocation4], %s2829_s1 }
 0x387   : > { %v591_v47 = vpop.permute.xlu0 %590 }
 0x388   : > { %v593_v48 = vadd.f32 %v591_v47, %v572_v46 }
 0x38a   : > { %672 = vrot.lane.b32.xlu1 %v593_v48, %s2498_s29  ;;  %s2515_s29 = smov 64  }
 0x38b   : > { %v764_v51 = vpop.permute.xlu0 %763 }
 0x38c   : > { %v766_v52 = vadd.f32 %v764_v51, %v751_v50 }
 0x38e   : > { %842 = vrot.lane.b32.xlu1 %v766_v52, %s2500_s17 }
 0x38f   : > { %v936_v55 = vpop.permute.xlu0 %935 }
 0x390   : > { %v938_v56 = vadd.f32 %v936_v55, %v923_v53 }
 0x392   : > { %1014 = vrot.lane.b32.xlu1 %v938_v56, %s2497_s16  ;;  %s2963_s16 = sshll.u32 %s2475_s12, 7 }
 0x393   : > { %v1105_v58 = vpop.permute.xlu0 %1104  ;;  %s2970_s21 = scalar_lea.hbm %s3131_s19, %s2963_s16 }
 0x394   : > { %v1107_v59 = vadd.f32 %v1105_v58, %v1092_v57 }
 0x396   : > { %1183 = vrot.lane.b32.xlu1 %v1107_v59, %s2499_s22  ;;  %s463_s22 = scalar_lea.vmem [#allocation14], %s2832_s23 }
 0x397   : > { %v768_v60 = vpop.permute.xlu0 %767  ;;  %s1585_s17 = sshll.u32 %s463_s22, 4  ;;  %s2972_s17 = int_to_ptr.vmem [resolvable:$true] %s1585_s17 }
 0x39a   : > { %1334 = vrot.lane.b32.xlu1 %v2866_v12, %s2514_s27  ;;  %s2329_s27 = scalar_lea.vmem %s2972_s17, 128 }
 0x39b   : > { %v940_v62 = vpop.permute.xlu0 %939  ;;  %p2330_p2 = scmp.ne.s32.totalorder %s2972_s17, %s2329_s27 }
 0x39d   : > { %p2331_p8 = pnand %p2330_p2, %p3132_p5 }
 0x39e   : > { %1483 = vrot.lane.b32.xlu1 %v2866_v12, %s2515_s29  ;;  %s2516_s29 = smov [#allocation14]  }
 0x39f   : > { %v1109_v0 = vpop.permute.xlu0 %1108  ;;  %p2332_p3 = pneg %p2331_p8  ;;  %s2333_s28 = sshll.u32 %s2516_s29, 4  ;;  %s2334_s28 = int_to_ptr.vmem [resolvable:$false] %s2333_s28 }
 0x3a0   : > { %s2335_s9 = scalar_lea.vmem %s2334_s28, 256  ;;  %p2336_p11 = scmp.lt.s32.totalorder %s2972_s17, %s2334_s28 }
 0x3a1   : > { %p2337_p6 = scmp.lt.s32.totalorder %s2335_s9, %s2329_s27 }
 0x3a3   : > { %v1261_v4 = vpop.permute.xlu0 %1260  ;;  %p2338_p13 = por %p2337_p6, %p2336_p11 }
 0x3a5   : > { %p2339_p12 = pnand %p2338_p13, %p2332_p3 }
 0x3a7   : > { %v1410_v6 = vpop.permute.xlu0 %1409 }
 0x3fc   : > { %v673_v61 = vpop.permute.xlu1 %672 }
 0x3fd   : > { %1916 = vmatmul.mubr.msk.f32.vlgmr.msra.gmra.mrb[2].mxu1 %vm674_vm5, %v673_v61 }
 0x3fe   : > { %1919 = vmatpush3.msk.msra.mxu1 %vm597_vm2, %v2861_v9  ;;  %1920 = vmatprep.mubr.msk.f32.mxu1 %vm2495_vm0, %v2496_v1 }
 0x3ff   : > { %1928 = vmatprep.subr.mxu1 %v2496_v1 }
 0x400   : > { %v843_v63 = vpop.permute.xlu1 %842 }
 0x401   : > { %1921 = vmatmul.mubr.msk.f32.vlgmr.msra.gmra.mrb[4].mxu1 %vm594_vm3, %v768_v60  ;;  %1926 = vmatmul.mubr.msk.f32.vlgmr.msra.gmra.mrb[2].mxu0 %vm674_vm5, %v843_v63 }
 0x402   : > { %1929 = vmatpush3.msk.msra.mxu1 %vm597_vm2, %v2861_v9  ;;  %1934 = vmatpush3.msra.mxu0 %v2891_v43 }
 0x403   : > { %1935 = vmatprep.mubr.msk.f32.mxu0 %vm2495_vm0, %v2496_v1  ;;  %1943 = vmatprep.subr.mxu0 %v2496_v1 }
 0x404   : > { %v1015_v2 = vpop.permute.xlu1 %1014  ;;  %1930 = vmatprep.mubr.msk.f32.mxu1 %vm2495_vm0, %v2496_v1  ;;  %1938 = vmatprep.subr.mxu1 %v2496_v1 }
 0x405   : > { %1931 = vmatmul.mubr.msk.f32.vlgmr.msra.gmra.mrb[6].mxu1 %vm594_vm3, %v940_v62  ;;  %1936 = vmatmul.mubr.msk.f32.vlgmr.msra.gmra.mrb[4].mxu0 %vm674_vm5, %v1015_v2 }
 0x406   : > { %1939 = vmatpush3.msk.msra.mxu1 %vm597_vm2, %v2861_v9  ;;  %1944 = vmatpush3.msra.mxu0 %v2891_v43 }
 0x407   : > { %1945 = vmatprep.mubr.msk.f32.mxu0 %vm2495_vm0, %v2496_v1  ;;  %1953 = vmatprep.subr.mxu0 %v2496_v1 }
 0x408   : > { %v1184_v3 = vpop.permute.xlu1 %1183  ;;  %1940 = vmatprep.mubr.msk.f32.mxu1 %vm2495_vm0, %v2496_v1  ;;  %1948 = vmatprep.subr.mxu1 %v2496_v1 }
 0x409   : > { %1941 = vmatmul.mubr.msk.f32.vlgmr.msra.gmra.mrb[8].mxu1 %vm594_vm3, %v1109_v0  ;;  %1946 = vmatmul.mubr.msk.f32.vlgmr.msra.gmra.mrb[6].mxu0 %vm674_vm5, %v1184_v3 }
 0x40a   : > { %1949 = vmatpush3.msk.msra.mxu1 %vm597_vm2, %v2861_v9  ;;  %1954 = vmatpush3.msra.mxu0 %v2891_v43 }
 0x40b   : > { %1955 = vmatprep.mubr.msk.f32.mxu0 %vm2495_vm0, %v2496_v1  ;;  %1963 = vmatprep.subr.mxu0 %v2496_v1 }
 0x40c   : > { %v1335_v5 = vpop.permute.xlu1 %1334  ;;  %1950 = vmatprep.mubr.msk.f32.mxu1 %vm2495_vm0, %v2496_v1  ;;  %1958 = vmatprep.subr.mxu1 %v2496_v1 }
 0x40d   : > { %1951 = vmatmul.mubr.msk.f32.vlgmr.msra.gmra.mrb[10].mxu1 %vm594_vm3, %v1261_v4  ;;  %1956 = vmatmul.mubr.msk.f32.vlgmr.msra.gmra.mrb[8].mxu0 %vm674_vm5, %v1335_v5 }
 0x40e   : > { %1959 = vmatpush3.msk.msra.mxu1 %vm597_vm2, %v2861_v9  ;;  %1964 = vmatpush3.msra.mxu0 %v2891_v43 }
 0x40f   : > { %1965 = vmatprep.mubr.msk.f32.mxu0 %vm2495_vm0, %v2496_v1  ;;  %1960 = vmatprep.mubr.msk.f32.mxu1 %vm2495_vm0, %v2496_v1 }
 0x410   : > { %v1484_v7 = vpop.permute.xlu1 %1483 }
 0x411   : > { %1961 = vmatmul.mubr.msk.f32.vlgmr.msra.gmra.mrb[12].mxu1 %vm594_vm3, %v1410_v6  ;;  %1966 = vmatmul.mubr.msk.f32.vlgmr.msra.gmra.mrb[10].mxu0 %vm674_vm5, %v1484_v7 }
 0x4d0   : > { %v743_v8 = vpop.f32.mrb[2].mxu1 }
 0x4d1   : > { %v747_v10 = vmul.f32 %v743_v8, %v2880_v19  ;;  %v1917_v9 = vpop.f32.mrb[3].mxu1 }
 0x4d4   : > { %v837_v11 = vpop.f32.mrb[4].mxu1  ;;  %v912_v12 = vpop.f32.mrb[2].mxu0 }
 0x4d5   : > { %v916_v13 = vmul.f32 %v912_v12, %v837_v11  ;;  %v1922_v14 = vpop.f32.mrb[5].mxu1  ;;  %v1927_v15 = vpop.f32.mrb[3].mxu0 }
 0x4d7   : > { %v917_v1 = vadd.f32 %v916_v13, %v747_v10 }
 0x4d8   : > { %v1009_v16 = vpop.f32.mrb[6].mxu1  ;;  %v1084_v17 = vpop.f32.mrb[4].mxu0 }
 0x4d9   : > { %v918_v18 = vmul.f32 0.35355338, %v917_v1  ;;  %v1088_v19 = vmul.f32 %v1084_v17, %v1009_v16  ;;  %v1932_v20 = vpop.f32.mrb[7].mxu1  ;;  %v1937_v21 = vpop.f32.mrb[5].mxu0 }
 0x4db   : > { %919 = vst.msk [vmem:[%s463_s22] sm:$0xff] %vm490_vm1, %v918_v18 }
 0x4dc   : > { %v1178_v22 = vpop.f32.mrb[8].mxu1  ;;  %v1253_v23 = vpop.f32.mrb[6].mxu0 }
 0x4dd   : > { %2342 = shalt.err (!%p2339_p12)
}
 0x4de   : > { %s2343_s1 = scalar_lea.hbm %s2970_s21, 128  ;;  %s2347_s29 = scalar_lea.hbm %s3131_s19, 256 }
 0x4df   : > { %p2344_p4 = scmp.ne.s32.totalorder %s2970_s21, %s2343_s1  ;;  %p2348_p1 = scmp.lt.u32.totalorder %s2970_s21, %s3131_s19 }
 0x4e0   : > { %p2349_p0 = scmp.lt.u32.totalorder %s2347_s29, %s2343_s1  ;;  %p2351_p2 = scmp.lt.u32.totalorder %s2343_s1, %s2970_s21 }
 0x4e1   : > { %p2345_p9 = pnand %p2344_p4, %p3132_p5 }
 0x4e2   : > { %p2350_p7 = por %p2349_p0, %p2348_p1 }
 0x4e3   : > { %p2346_p10 = pneg %p2345_p9 }
 0x4e4   : > { %p2352_p8 = por %p2351_p2, %p2350_p7 }
 0x4e6   : > { %p2353_p3 = pnand %p2352_p8, %p2346_p10 }
 0x4e8   : > { %2356 = shalt.err (!%p2353_p3)
}
 0x4e9   : > { %2000 = dma.vmem_to_hbm [thread:$0]  (%p3132_p5), %s2972_s17, 128, %s2970_s21, %s1561_s26   ;;  %v1257_v24 = vmul.f32 %v1253_v23, %v1178_v22  ;;  %v1942_v25 = vpop.f32.mrb[9].mxu1  ;;  %v1947_v26 = vpop.f32.mrb[7].mxu0 }
 0x4ea   : > { %s3133_s27 = sld [smem:[#allocation26_spill]]  ;;  %v1330_v28 = vpop.f32.mrb[10].mxu1  ;;  %v1404_v29 = vpop.f32.mrb[8].mxu0  ;;  %s3134_s17 = scalar_lea.vmem [#allocation15], %s2832_s23 }
 0x4eb   : > { %v1258_v27 = vadd.f32 %v1257_v24, %v1088_v19  ;;  %v1408_v30 = vmul.f32 %v1404_v29, %v1330_v28  ;;  %v1952_v31 = vpop.f32.mrb[11].mxu1  ;;  %v1957_v32 = vpop.f32.mrb[9].mxu0  ;;  %s3135_s21 = sand.u32 1, %s2600_s15   ;;  %s2357_s1 = scalar_lea.vmem %s3010_s20, 128 }
 0x4ec   : > { %s3017_s26 = scalar_lea.sflag [#allocation16], %s3135_s21  ;;  %p2358_p11 = scmp.ne.s32.totalorder %s3010_s20, %s2357_s1 }
 0x4ed   : > { %1259 = vst.msk [vmem:[%s3134_s17] sm:$0xff] %vm490_vm1, %v1258_v27  ;;  %s2517_s22 = smov [#allocation15]  }
 0x4ee   : > { %p2359_p6 = pnand %p2358_p11, %p3132_p5  ;;  %s2361_s29 = sshll.u32 %s2517_s22, 4  ;;  %s2362_s29 = int_to_ptr.vmem [resolvable:$false] %s2361_s29 }
 0x4ef   : > { %s2363_s28 = scalar_lea.vmem %s2362_s29, 256  ;;  %p2364_p12 = scmp.lt.s32.totalorder %s3010_s20, %s2362_s29 }
 0x4f0   : > { %s3007_s9 = scalar_lea.hbm %s3133_s27, %s2963_s16  ;;  %p2360_p13 = pneg %p2359_p6 }
 0x4f1   : > { %p2365_p4 = scmp.lt.s32.totalorder %s2363_s28, %s2357_s1 }
 0x4f3   : > { %p2366_p9 = por %p2365_p4, %p2364_p12 }
 0x4f5   : > { %p2367_p10 = pnand %p2366_p9, %p2360_p13 }
 0x4f7   : > { %2370 = shalt.err (!%p2367_p10)
}
 0x4f8   : > { %s2371_s15 = scalar_lea.hbm %s3007_s9, 128  ;;  %s2375_s17 = scalar_lea.hbm %s3133_s27, 256 }
 0x4f9   : > { %p2372_p1 = scmp.ne.s32.totalorder %s3007_s9, %s2371_s15  ;;  %p2376_p2 = scmp.lt.u32.totalorder %s3007_s9, %s3133_s27 }
 0x4fa   : > { %p2377_p8 = scmp.lt.u32.totalorder %s2375_s17, %s2371_s15  ;;  %p2379_p11 = scmp.lt.u32.totalorder %s2371_s15, %s3007_s9 }
 0x4fb   : > { %p2373_p0 = pnand %p2372_p1, %p3132_p5 }
 0x4fc   : > { %p2378_p3 = por %p2377_p8, %p2376_p2 }
 0x4fd   : > { %p2374_p7 = pneg %p2373_p0 }
 0x4fe   : > { %p2380_p6 = por %p2379_p11, %p2378_p3 }
 0x500   : > { %p2381_p13 = pnand %p2380_p6, %p2374_p7 }
 0x502   : > { %2384 = shalt.err (!%p2381_p13)
}
 0x503   : > { %2001 = dma.vmem_to_hbm [thread:$0]  (%p3132_p5), %s3010_s20, 128, %s3007_s9, %s3017_s26   ;;  %v1479_v33 = vpop.f32.mrb[12].mxu1  ;;  %v1553_v34 = vpop.f32.mrb[10].mxu0 }
 0x504   : > { %s477_s1 = scalar_lea.vmem [#allocation17], %s2832_s23  ;;  %v1557_v35 = vmul.f32 %v1553_v34, %v1479_v33  ;;  %v1962_v36 = vpop.f32.mrb[13].mxu1  ;;  %v1967_v37 = vpop.f32.mrb[11].mxu0  ;;  %s3136_s12 = sld [smem:[#allocation27_spill]] }
 0x505   : > { %s1613_s29 = sshll.u32 %s477_s1, 4  ;;  %s2518_s20 = smov [#allocation17]   ;;  %s1614_s29 = int_to_ptr.vmem [resolvable:$true] %s1613_s29 }
 0x506   : > { %v1558_v38 = vadd.f32 %v1557_v35, %v1408_v30  ;;  %s2385_s21 = scalar_lea.vmem %s1614_s29, 128  ;;  %s2389_s23 = sshll.u32 %s2518_s20, 4  ;;  %s2390_s23 = int_to_ptr.vmem [resolvable:$false] %s2389_s23 }
 0x507   : > { %p2386_p12 = scmp.ne.s32.totalorder %s1614_s29, %s2385_s21  ;;  %s2391_s9 = scalar_lea.vmem %s2390_s23, 256 }
 0x508   : > { %1559 = vst.msk [vmem:[%s477_s1] sm:$0xff] %vm490_vm1, %v1558_v38  ;;  %p2392_p10 = scmp.lt.s32.totalorder %s1614_s29, %s2390_s23  ;;  %p2393_p1 = scmp.lt.s32.totalorder %s2391_s9, %s2385_s21 }
 0x509   : > { %p2387_p4 = pnand %p2386_p12, %p3132_p5 }
 0x50a   : > { %s3137_s25 = smov %s3136_s12  ;;  %s3046_s17 = scalar_lea.hbm %s3136_s12, %s2963_s16 }
 0x50b   : > { %p2388_p9 = pneg %p2387_p4  ;;  %p2394_p0 = por %p2393_p1, %p2392_p10 }
 0x50d   : > { %p2395_p7 = pnand %p2394_p0, %p2388_p9 }
 0x50f   : > { %2398 = shalt.err (!%p2395_p7)
}
 0x510   : > { %s2399_s16 = scalar_lea.hbm %s3046_s17, 128  ;;  %s2403_s28 = scalar_lea.hbm %s3137_s25, 256 }
 0x511   : > { %p2400_p2 = scmp.ne.s32.totalorder %s3046_s17, %s2399_s16  ;;  %p2404_p11 = scmp.lt.u32.totalorder %s3046_s17, %s3137_s25 }
 0x512   : > { %p2405_p6 = scmp.lt.u32.totalorder %s2403_s28, %s2399_s16  ;;  %p2407_p12 = scmp.lt.u32.totalorder %s2399_s16, %s3046_s17 }
 0x513   : > { %p2401_p8 = pnand %p2400_p2, %p3132_p5 }
 0x514   : > { %p2406_p13 = por %p2405_p6, %p2404_p11 }
 0x515   : > { %p2402_p3 = pneg %p2401_p8 }
 0x516   : > { %p2408_p4 = por %p2407_p12, %p2406_p13 }
 0x518   : > { %p2409_p9 = pnand %p2408_p4, %p2402_p3 }
 0x51a   : > { %2412 = shalt.err (!%p2409_p9)
}
 0x51b   : > { %2002 = dma.vmem_to_hbm [thread:$0]  (%p3132_p5), %s1614_s29, 128, %s3046_s17, %s3017_s26  }
 0x51c PF: > { %s1625_s21 = sand.u32 1, %s2463_s30   ;;  %p3138_p10 = scmp.ne.s32.totalorder %s3122_s24, 0 }
 0x51d   : > { %p3139_p1 = scmp.ge.s32.totalorder %s2483_s14, 2  ;;  %s1626_s20 = scalar_lea.sflag [#allocation4], %s1625_s21 }
 0x51f   : > { %p2030_p0 = pnand %p3139_p1, %p3138_p10 }
 0x521   : > { %2454 = dma.done.wait (!%p2030_p0), %s1626_s20, 128  }
 0x522   : > { %2456 = vsyncadd (!%p2030_p0), %s1626_s20, 4294967168  ;;  %s3140_s23 = sadd.s32 4294967294, %s2483_s14  }
 0x523   : > { %s1634_s9 = sand.u32 1, %s3140_s23  }
 0x524   : > { %s1635_s16 = scalar_lea.sflag [#allocation16], %s1634_s9 }
 0x525   : > { %2458 = dma.done.wait (!%p2030_p0), %s1635_s16, 256  }
 0x526   : > { %2460 = vsyncadd (!%p2030_p0), %s1635_s16, 4294967040  ;;  %s32_s14 = sadd.s32 1, %s2483_s14   ;;  %s3141_s30 = smov %s2467_s10 }
 0x527   : > { %p29_p5 = scmp.ge.s32.totalorder %s32_s14, 4   ;;  %s3142_s10 = smov %s2471_s11 }
 0x528   : > { %s3143_s11 = smov %s2779_s8  ;;  %s3144_s12 = smov %s2479_s13 }
 0x529   : > { %s3145_s13 = smov %s3147_s7  ;;  %31 = sbr.rel (!%p29_p5) target bundleno = 16 (0x10), region = 151 }
 0x530   :  { %1649 = vsyncpa [#allocation3], 1 }
 0x531   :  { %1651 = vsyncpa [#allocation3 + $0x1], 1 }
 0x532   :  { %1652 = vsyncpa [#allocation6], 1 }
 0x533   :  { %1653 = vsyncpa [#allocation9], 1 }
 0x534   :  { %1654 = vsyncpa [#allocation12], 1 }
 0x535   :  { %1655 = vsyncpa [#allocation4], 1 }
 0x536   :  { %1657 = vsyncpa [#allocation4 + $0x1], 1 }
 0x537   :  { %1658 = vsyncpa [#allocation16], 1 }
 0x538   :  { %1660 = vsyncpa [#allocation16 + $0x1], 1 }

</bundles_post_ra>
